<compile_context>
chip_gen: v7x
topology: tpu7x:2x2x1
jax: 0.10.0
libtpu: 0.0.40
codegen_flags: <defaults>
</compile_context>

<pallas_src>
import jax
import jax.numpy as jnp
from jax.experimental import pallas as pl
from jax.experimental.pallas import tpu as pltpu


def channel_attention_kernel(x_ref, w1t_ref, w2t_ref, o_ref):
    # x_ref: (BB, C, HW)   w1t_ref: (C, Cr)   w2t_ref: (Cr, C)   o_ref: (BB, C, HW)
    x = x_ref[...]                                         # stays in input dtype
    hw = x.shape[-1]

    # ---- adaptive avg / max pool over the spatial lanes (f32 accumulation) ----
    avg = jnp.sum(x, axis=-1, dtype=jnp.float32) * jnp.float32(1.0 / hw)   # (BB, C)
    mx = jnp.max(x, axis=-1).astype(jnp.float32)                           # (BB, C)

    w1t = w1t_ref[...]                                     # (C, Cr) f32, resident
    w2t = w2t_ref[...]                                     # (Cr, C) f32, resident

    # ---- fc on each pooled vector (tiny matmuls; no sublane-misaligned concat) ----
    h_avg = jnp.maximum(jnp.dot(avg, w1t, preferred_element_type=jnp.float32), 0.0)
    y_avg = jnp.dot(h_avg, w2t, preferred_element_type=jnp.float32)        # (BB, C)
    h_mx = jnp.maximum(jnp.dot(mx, w1t, preferred_element_type=jnp.float32), 0.0)
    y_mx = jnp.dot(h_mx, w2t, preferred_element_type=jnp.float32)          # (BB, C)

    gate = jax.nn.sigmoid(y_avg + y_mx)                                    # (BB, C) f32

    # ---- apply gate; re-read x_ref so the multiply is a fresh VMEM stream ------
    o_ref[...] = (x_ref[...] * gate.astype(o_ref.dtype)[:, :, None]).astype(o_ref.dtype)


def channel_attention(x_nchw, w1, w2, *, vmem_budget_bytes=None):
    """x_nchw: (B, C, H, W); w1: (C//r, C); w2: (C, C//r). Returns (B, C, H, W)."""
    B, C, H, W = x_nchw.shape
    Cr = w1.shape[0]
    assert w1.shape == (Cr, C) and w2.shape == (C, Cr)

    HW = H * W
    x_flat = x_nchw.reshape(B, C, HW)       # no padding: full-extent last block dim

    # Transposed f32 weights: constant index_map -> resident across the grid,
    # no per-step cast / transpose inside the kernel.
    w1_t = w1.T.astype(jnp.float32)                        # (C, Cr)
    w2_t = w2.T.astype(jnp.float32)                        # (Cr, C)

    # ---- generation-aware VMEM budgeting (v7x: 64 MiB, v5e/v6e: 128 MiB) ------
    try:
        vmem_cap = int(pltpu.get_tpu_info().vmem_capacity_bytes)
    except Exception:
        vmem_cap = 128 * 1024 * 1024
    if vmem_budget_bytes is None:
        vmem_budget_bytes = min(24 * 1024 * 1024, vmem_cap // 4)

    itemsize = jnp.dtype(x_nchw.dtype).itemsize
    per_batch_tile = C * HW * itemsize

    # ---- batch-blocking: keep >= min(B, 4) grid steps (pipelining + megacore),
    # and double-buffered in+out tiles under the VMEM budget. -------------------
    target_steps = min(B, 4)
    BB = 1
    for cand in range(B, 0, -1):
        if B % cand != 0:
            continue
        if B // cand < target_steps:
            continue
        if 4 * cand * per_batch_tile <= vmem_budget_bytes:
            BB = cand
            break
    # TODO(synk): if even BB=1 overflows the budget (very large C*HW on v7x),
    # switch to a two-pass HW-tiled variant (pass 1: accumulate sum/max per HW
    # tile, pass 2: apply the gate) instead of a single whole-row tile.

    grid = (B // BB,)
    tile_bytes = BB * per_batch_tile
    weight_bytes = (w1_t.size + w2_t.size) * 4
    vmem_limit = int(
        min(max(4 * tile_bytes + weight_bytes + (2 << 20), 32 * 1024 * 1024),
            (vmem_cap * 85) // 100)
    )

    cost = pl.CostEstimate(
        flops=int(B * (4 * C * Cr + 3 * C * HW)),
        transcendentals=int(B * C),
        bytes_accessed=int(2 * B * C * HW * itemsize + weight_bytes),
    )

    out_flat = pl.pallas_call(
        channel_attention_kernel,
        out_shape=jax.ShapeDtypeStruct((B, C, HW), x_nchw.dtype),
        grid_spec=pltpu.PrefetchScalarGridSpec(
            num_scalar_prefetch=0,
            grid=grid,
            in_specs=[
                pl.BlockSpec((BB, C, HW), lambda b: (b, 0, 0)),
                pl.BlockSpec((C, Cr), lambda b: (0, 0)),
                pl.BlockSpec((Cr, C), lambda b: (0, 0)),
            ],
            out_specs=pl.BlockSpec((BB, C, HW), lambda b: (b, 0, 0)),
        ),
        compiler_params=pltpu.CompilerParams(
            dimension_semantics=("parallel",),
            vmem_limit_bytes=vmem_limit,
        ),
        cost_estimate=cost,
    )(x_flat, w1_t, w2_t)

    return out_flat.reshape(B, C, H, W)


def channel_attention_ref(x, w1, w2):
    # Pure-JAX reference (mirrors the PyTorch forward).
    avg = jnp.mean(x, axis=(2, 3), keepdims=True)          # (B, C, 1, 1)
    mx = jnp.max(x, axis=(2, 3), keepdims=True)            # (B, C, 1, 1)

    def fc(v):
        v = v[:, :, 0, 0]                                   # (B, C)
        h = jnp.maximum(v @ w1.T, 0.0)                      # (B, C//r)
        return (h @ w2.T)[:, :, None, None]                 # (B, C, 1, 1)

    return x * jax.nn.sigmoid(fc(avg) + fc(mx))


if __name__ == "__main__":
    B, C, H, W = 2, 64, 16, 16
    reduction = 16
    hidden = C // reduction                                 # 4

    key = jax.random.PRNGKey(0)
    kx, k1, k2 = jax.random.split(key, 3)
    x = jax.random.normal(kx, (B, C, H, W), dtype=jnp.float32)
    # Conv2d(C, C//r, 1, bias=False).weight squeezed -> (C//r, C)
    w1 = jax.random.normal(k1, (hidden, C), dtype=jnp.float32) * 0.1
    # Conv2d(C//r, C, 1, bias=False).weight squeezed -> (C, C//r)
    w2 = jax.random.normal(k2, (C, hidden), dtype=jnp.float32) * 0.1

    out = channel_attention(x, w1, w2)
    out = jax.block_until_ready(out)

    ref = channel_attention_ref(x, w1, w2)
    assert out.shape == (B, C, H, W)
    assert jnp.allclose(out, ref, atol=1e-5, rtol=1e-5), "mismatch vs reference"

    print("KERNEL_OK")
</pallas_src>

<mosaic_0001>
module attributes {stable_mosaic.version = 11 : i64} {
  func.func @channel_attention_kernel(%arg0: i32, %arg1: memref<1x64x256xf32, #tpu.memory_space<vmem>>, %arg2: memref<64x4xf32, #tpu.memory_space<vmem>>, %arg3: memref<4x64xf32, #tpu.memory_space<vmem>>, %arg4: memref<1x64x256xf32, #tpu.memory_space<vmem>>) attributes {dimension_semantics = [#tpu.dimension_semantics<parallel>], iteration_bounds = array<i64: 2>, scalar_prefetch = 0 : i64, scratch_operands = 0 : i64, tpu.core_type = #tpu.core_type<tc>, window_params = [{transform_indices = @transform_0, window_bounds = array<i64: 1, 64, 256>}, {pipeline_mode = #tpu.pipeline_mode<synchronous>, transform_indices = @transform_1, window_bounds = array<i64: 64, 4>}, {pipeline_mode = #tpu.pipeline_mode<synchronous>, transform_indices = @transform_2, window_bounds = array<i64: 4, 64>}, {transform_indices = @transform_3, window_bounds = array<i64: 1, 64, 256>}]} {
    %c0 = arith.constant 0 : index
    %c0_0 = arith.constant 0 : index
    %c0_1 = arith.constant 0 : index
    %0 = vector.load %arg1[%c0, %c0_0, %c0_1] : memref<1x64x256xf32, #tpu.memory_space<vmem>>, vector<1x64x256xf32>
    %cst = arith.constant dense<0.000000e+00> : vector<1x64xf32>
    %1 = vector.multi_reduction <add>, %0, %cst [2] : vector<1x64x256xf32> to vector<1x64xf32>
    %cst_2 = arith.constant 3.906250e-03 : f32
    %2 = vector.broadcast %cst_2 : f32 to vector<1x64xf32>
    %3 = arith.mulf %1, %2 : vector<1x64xf32>
    %cst_3 = arith.constant dense<0xFF800000> : vector<1x64xf32>
    %4 = vector.multi_reduction <maximumf>, %0, %cst_3 [2] : vector<1x64x256xf32> to vector<1x64xf32>
    %c0_4 = arith.constant 0 : index
    %c0_5 = arith.constant 0 : index
    %5 = vector.load %arg2[%c0_4, %c0_5] : memref<64x4xf32, #tpu.memory_space<vmem>>, vector<64x4xf32>
    %c0_6 = arith.constant 0 : index
    %c0_7 = arith.constant 0 : index
    %6 = vector.load %arg3[%c0_6, %c0_7] : memref<4x64xf32, #tpu.memory_space<vmem>>, vector<4x64xf32>
    %cst_8 = arith.constant dense<0.000000e+00> : vector<1x4xf32>
    %7 = tpu.matmul %3, %5, %cst_8 {dimension_numbers = #tpu.dot_dimension_numbers<[1], [0], [0], [1], [0, 0, 1, 1], [], []>} : vector<1x64xf32>, vector<64x4xf32>, vector<1x4xf32> -> vector<1x4xf32>
    %cst_9 = arith.constant 0.000000e+00 : f32
    %8 = vector.broadcast %cst_9 : f32 to vector<1x4xf32>
    %9 = arith.maximumf %7, %8 : vector<1x4xf32>
    %cst_10 = arith.constant dense<0.000000e+00> : vector<1x64xf32>
    %10 = tpu.matmul %9, %6, %cst_10 {dimension_numbers = #tpu.dot_dimension_numbers<[1], [0], [0], [1], [0, 0, 1, 1], [], []>} : vector<1x4xf32>, vector<4x64xf32>, vector<1x64xf32> -> vector<1x64xf32>
    %cst_11 = arith.constant dense<0.000000e+00> : vector<1x4xf32>
    %11 = tpu.matmul %4, %5, %cst_11 {dimension_numbers = #tpu.dot_dimension_numbers<[1], [0], [0], [1], [0, 0, 1, 1], [], []>} : vector<1x64xf32>, vector<64x4xf32>, vector<1x4xf32> -> vector<1x4xf32>
    %cst_12 = arith.constant 0.000000e+00 : f32
    %12 = vector.broadcast %cst_12 : f32 to vector<1x4xf32>
    %13 = arith.maximumf %11, %12 : vector<1x4xf32>
    %cst_13 = arith.constant dense<0.000000e+00> : vector<1x64xf32>
    %14 = tpu.matmul %13, %6, %cst_13 {dimension_numbers = #tpu.dot_dimension_numbers<[1], [0], [0], [1], [0, 0, 1, 1], [], []>} : vector<1x4xf32>, vector<4x64xf32>, vector<1x64xf32> -> vector<1x64xf32>
    %15 = arith.addf %10, %14 : vector<1x64xf32>
    %16 = arith.negf %15 : vector<1x64xf32>
    %17 = math.exp %16 : vector<1x64xf32>
    %cst_14 = arith.constant 1.000000e+00 : f32
    %18 = vector.broadcast %cst_14 : f32 to vector<1x64xf32>
    %19 = arith.addf %18, %17 : vector<1x64xf32>
    %20 = arith.divf %18, %19 : vector<1x64xf32>
    %c0_15 = arith.constant 0 : index
    %c0_16 = arith.constant 0 : index
    %c0_17 = arith.constant 0 : index
    %21 = vector.load %arg1[%c0_15, %c0_16, %c0_17] : memref<1x64x256xf32, #tpu.memory_space<vmem>>, vector<1x64x256xf32>
    %22 = vector.shape_cast %20 : vector<1x64xf32> to vector<1x64x1xf32>
    %23 = vector.broadcast %22 : vector<1x64x1xf32> to vector<1x64x256xf32>
    %24 = arith.mulf %21, %23 : vector<1x64x256xf32>
    %c0_18 = arith.constant 0 : index
    %c0_19 = arith.constant 0 : index
    %c0_20 = arith.constant 0 : index
    %25 = vector.load %arg4[%c0_18, %c0_19, %c0_20] : memref<1x64x256xf32, #tpu.memory_space<vmem>>, vector<1x64x256xf32>
    tpu.vector_store %arg4[%c0_18, %c0_19, %c0_20], %24 {strides = array<i32>} : memref<1x64x256xf32, #tpu.memory_space<vmem>>, vector<1x64x256xf32>,
    return
  }
  func.func @transform_0(%arg0: i32) -> (i32, i32, i32) {
    %c0_i32 = arith.constant 0 : i32
    %c0_i32_0 = arith.constant 0 : i32
    %c0_i32_1 = arith.constant 0 : i32
    return %arg0, %c0_i32, %c0_i32_0 : i32, i32, i32
  }
  func.func @transform_1(%arg0: i32) -> (i32, i32) {
    %c0_i32 = arith.constant 0 : i32
    %c0_i32_0 = arith.constant 0 : i32
    %c0_i32_1 = arith.constant 0 : i32
    return %c0_i32, %c0_i32_0 : i32, i32
  }
  func.func @transform_2(%arg0: i32) -> (i32, i32) {
    %c0_i32 = arith.constant 0 : i32
    %c0_i32_0 = arith.constant 0 : i32
    %c0_i32_1 = arith.constant 0 : i32
    return %c0_i32, %c0_i32_0 : i32, i32
  }
  func.func @transform_3(%arg0: i32) -> (i32, i32, i32) {
    %c0_i32 = arith.constant 0 : i32
    %c0_i32_0 = arith.constant 0 : i32
    %c0_i32_1 = arith.constant 0 : i32
    return %arg0, %c0_i32, %c0_i32_0 : i32, i32, i32
  }
}

</mosaic_0001>

<bundles_post_ra>
// kernel: tpu_custom_call.1
= control target key start
LH: loop header
LB: loop body
LE: loop exit
PB: predicated region body
PF: predicated region fallthrough
CT: control target
= control target key end

     0   :  { %8 = vsyncpa [#allocation3], 0  ;;  %s1485_s0 = inlined_call_operand.hbm [shape: f32[2,64,256], index: 0, kind: input, shape index: {}]   ;;  %s1486_s1 = inlined_call_operand.vmem [shape: f32[64,4], index: 1, kind: input, shape index: {}]   ;;  %s1487_s2 = inlined_call_operand.vmem [shape: f32[4,64], index: 2, kind: input, shape index: {}]   ;;  %s1488_s3 = inlined_call_operand.hbm [shape: f32[2,64,256], index: 3, kind: output, shape index: {}]  }
   0x1   :  { %10 = vsyncpa [#allocation3 + $0x1], 0 }
   0x2   :  { %11 = vsyncpa [#allocation4], 0 }
   0x3   :  { %13 = vsyncpa [#allocation4 + $0x1], 0  ;;  %s1140_s12 = smov 0   ;;  %s1142_s13 = smov 0  }
   0x4   :  { %s1144_s14 = smov 0   ;;  %s1146_s15 = smov 0  }
   0x5 LB: > { %s1161_s16 = sadd.s32 4294967295, %s1109_s15   ;;  %s838_s17 = sadd.s32 4294967294, %s1109_s15   ;;  %s1109_s15 = sphi %s1146_s15, %s1501_s15   ;;  %s1105_s14 = sphi %s1144_s14, %s1500_s14   ;;  %s1101_s13 = sphi %s1142_s13, %s1499_s13   ;;  %s1097_s12 = sphi %s1140_s12, %s1498_s12  }
   0x6   : > { %s1165_s18 = sadd.s32 1, %s1109_s15   ;;  %s26_s19 = sadd.s32 1, %s1105_s14 }
   0x7   : > { %s23_s20 = ssub.s32 %s1109_s15, %s1165_s18  ;;  %p33_p0 = scmp.ne.s32.totalorder %s1105_s14, %s1101_s13 }
   0x8   : > { %p24_p1 = scmp.eq.s32.totalorder %s23_s20, 0  ;;  %p34_p2 = scmp.eq.s32.totalorder %s1109_s15, 0 }
   0x9   : > { %p39_p3 = scmp.ne.s32.totalorder %s1101_s13, %s1097_s12  ;;  %p40_p4 = scmp.eq.s32.totalorder %s1161_s16, 0 }
   0xa   : > { %s1177_s21 = scalar_select %p24_p1, %s1105_s14, %s26_s19  }
   0xb   : > { %p1179_p5 = por %p34_p2, %p33_p0  ;;  %p1183_p6 = por %p40_p4, %p39_p3 }
   0xc   : > { %p105_p7 = scmp.eq.s32.totalorder %s1161_s16, 1  ;;  %p111_p8 = scmp.eq.s32.totalorder %s838_s17, 1 }
   0xd   : > { %p968_p10 = scmp.lt.s32.totalorder %s1109_s15, 2  ;;  %s137_s26 = sand.u32 1, %s1105_s14  }
   0xe   : > { %p1190_p11 = por %p105_p7, %p33_p0  ;;  %p1194_p12 = por %p111_p8, %p39_p3 }
   0xf   : > { %s859_s27 = sshll.u32 %s1109_s15, 11  ;;  %s841_s28 = sshll.u32 %s137_s26, 7 }
  0x10   : > { %s1492_s24 = scalar_select %p1190_p11, 1, 0 }
  0x11   : > { %s1493_s25 = scalar_select %p1194_p12, 1, 0 }
  0x12   : > { %s1203_s4 = scalar_lea.hbm %s1485_s0, %s859_s27  ;;  %s141_s5 = scalar_lea.vmem [#allocation2], %s841_s28 }
  0x13   : > { %s148_s6 = sshll.u32 %s141_s5, 4  ;;  %p1207_p13 = pnand %p968_p10, %p1179_p5  ;;  %s1211_s6 = int_to_ptr.vmem [resolvable:$true] %s148_s6 }
  0x14   : > { %s1213_s8 = scalar_lea.sflag [#allocation3], %s137_s26  ;;  %s1013_s9 = scalar_lea.hbm %s1203_s4, 2048 }
  0x15   : > { %p1014_p0 = scmp.ne.s32.totalorder %s1203_s4, %s1013_s9  ;;  %p1015_p1 = pneg %p1207_p13 }
  0x16   : > { %s1018_s17 = scalar_lea.hbm %s1485_s0, 4096  ;;  %p1019_p4 = scmp.lt.u32.totalorder %s1203_s4, %s1485_s0 }
  0x17   : > { %p1016_p2 = pnand %p1015_p1, %p1014_p0  ;;  %p1020_p5 = scmp.lt.u32.totalorder %s1018_s17, %s1013_s9 }
  0x18   : > { %p1022_p8 = scmp.lt.u32.totalorder %s1013_s9, %s1203_s4 }
  0x19   : > { %p1017_p3 = pneg %p1016_p2  ;;  %p1021_p7 = por %p1020_p5, %p1019_p4 }
  0x1b   : > { %p1023_p10 = por %p1022_p8, %p1021_p7 }
  0x1d   : > { %p1024_p9 = pnand %p1023_p10, %p1017_p3 }
  0x1f   : > { %1027 = shalt.err (!%p1024_p9)
}
  0x20   : > { %s1028_s22 = scalar_lea.vmem %s1211_s6, 2048  ;;  %s1111_s26 = smov [#allocation2]  }
  0x21   : > { %p1029_p0 = scmp.ne.s32.totalorder %s1211_s6, %s1028_s22  ;;  %s1033_s27 = sshll.u32 %s1111_s26, 4  ;;  %s1034_s27 = int_to_ptr.vmem [resolvable:$false] %s1033_s27 }
  0x22   : > { %s1035_s28 = scalar_lea.vmem %s1034_s27, 4096  ;;  %p1036_p11 = scmp.lt.s32.totalorder %s1211_s6, %s1034_s27 }
  0x23   : > { %p1031_p2 = pnand %p1029_p0, %p1015_p1  ;;  %p1037_p4 = scmp.lt.s32.totalorder %s1035_s28, %s1028_s22 }
  0x25   : > { %p1032_p12 = pneg %p1031_p2  ;;  %p1038_p5 = por %p1037_p4, %p1036_p11 }
  0x27   : > { %p1039_p7 = pnand %p1038_p5, %p1032_p12 }
  0x29   : > { %1042 = shalt.err (!%p1039_p7)
}
  0x2a   : > { %s1112_s29 = smov 256   ;;  %s1113_s30 = smov 16  }
  0x2b   : > { %963 = dma.hbm_to_vmem [thread:$0]  (!%p1207_p13), %s1203_s4, 2048, %s1211_s6, %s1213_s8, %s1112_s29, %s1112_s29, %s1113_s30  }
  0x2c   : > { %p844_p9 = scmp.ge.s32.totalorder %s1109_s15, 1  ;;  %p156_p1 = scmp.lt.s32.totalorder %s1109_s15, 3 }
  0x2e   : > { %p157_p3 = pnand %p844_p9, %p156_p1 }
  0x2f   : > { %s1244_s5 = sand.u32 (!%p157_p3), 1, %s1101_s13  }
  0x30   : > { %160 = sbr.rel (%p157_p3) target bundleno = 838 (0x346), region = 32  ;;  %s845_s9 = sshll.u32 (!%p157_p3), %s1244_s5, 7 }
  0x31   : > { %s163_s10 = scalar_lea.sflag (!%p157_p3), [#allocation3], %s1244_s5  ;;  %s1250_s11 = scalar_lea.vmem (!%p157_p3), [#allocation2], %s845_s9 }
  0x37   : > { %1088 = dma.done.wait (%p1183_p6), %s163_s10, 2048  }
  0x38   : > { %1090 = vsyncadd (%p1183_p6), %s163_s10, 4294965248  ;;  %v1257_v0 = vld [vmem:[%s1250_s11 + $0x20] sm:$0xff]  ;;  %v1260_v1 = vld [vmem:[%s1250_s11 + $0x28] sm:$0xff]  ;;  %v1114_v35 = vmov 0.0|0.0   ;;  %vm1115_vm0 = vmmov 0   ;;  %v1116_v45 = vmov 0.0   ;;  %v278_v48 = vlaneseq }
  0x39   : > { %v1263_v2 = vld [vmem:[%s1250_s11] sm:$0xff]  ;;  %v211_v3 = vadd.f32 %v1260_v1, %v1257_v0  ;;  %v1268_v4 = vld [vmem:[%s1250_s11 + $0x8] sm:$0xff]  ;;  %v1271_v5 = vld [vmem:[%s1250_s11 + $0x30] sm:$0xff]  ;;  %v243_v16 = vmax.f32 %v1257_v0, %v1260_v1  ;;  %931 = vmatprep.subr.bf16.mxu0 %v1114_v35  ;;  %943 = vmatprep.subr.bf16.mxu1 %v1114_v35  ;;  %vm289_vm1 = vcmask 130112   ;;  %vm296_vm2 = vcmask 195712   ;;  %s1404_s6 = scalar_lea.vmem [#allocation5], %s845_s9 }
  0x3a   : > { %v1274_v6 = vld [vmem:[%s1250_s11 + $0x38] sm:$0xff]  ;;  %v205_v7 = vadd.f32 %v1268_v4, %v1263_v2  ;;  %v1279_v8 = vld [vmem:[%s1250_s11 + $0x10] sm:$0xff]  ;;  %v237_v13 = vmax.f32 %v1263_v2, %v1268_v4  ;;  %v1293_v14 = vld [vmem:[%s1250_s11 + $0x40] sm:$0xff]  ;;  %899 = vmatprep.mubr.msk.f32.mxu0 %vm1115_vm0, %v1116_v45  ;;  %918 = vmatprep.mubr.msk.f32.mxu1 %vm1115_vm0, %v1116_v45  ;;  %v279_v51 = vand.u32 127, %v278_v48  ;;  %v1366_v55 = vshrl.u32 %v278_v48, 7  ;;  %s860_s9 = sshll.u32 %s1161_s16, 11 }
  0x3b   : > { %v1282_v9 = vld [vmem:[%s1250_s11 + $0x18] sm:$0xff]  ;;  %212 = vadd.xlane.f32.xlu1 %v211_v3  ;;  %v214_v10 = vadd.f32 %v1274_v6, %v1271_v5  ;;  %v1296_v15 = vld [vmem:[%s1250_s11 + $0x48] sm:$0xff]  ;;  %v1303_v18 = vld [vmem:[%s1250_s11 + $0x50] sm:$0xff]  ;;  %v246_v20 = vmax.f32 %v1271_v5, %v1274_v6  ;;  %vm303_vm3 = vcmask 261312   ;;  %vm310_vm4 = vcmask 326912   ;;  %s765_s7 = sshll.u32 %s1404_s6, 4  ;;  %s1435_s19 = scalar_lea.hbm %s1488_s3, %s860_s9  ;;  %s1437_s7 = int_to_ptr.vmem [resolvable:$true] %s765_s7 }
  0x3c   : > { %206 = vadd.xlane.f32.xlu0 %v205_v7  ;;  %v208_v11 = vadd.f32 %v1282_v9, %v1279_v8  ;;  %v240_v12 = vmax.f32 %v1279_v8, %v1282_v9  ;;  %v217_v17 = vadd.f32 %v1296_v15, %v1293_v14  ;;  %v1306_v19 = vld [vmem:[%s1250_s11 + $0x58] sm:$0xff]  ;;  %v1313_v22 = vld [vmem:[%s1250_s11 + $0x60] sm:$0xff]  ;;  %v1316_v23 = vld [vmem:[%s1250_s11 + $0x68] sm:$0xff]  ;;  %v249_v24 = vmax.f32 %v1293_v14, %v1296_v15  ;;  %s752_s16 = scalar_lea.sflag [#allocation4], %s1244_s5  ;;  %s1043_s20 = scalar_lea.vmem %s1437_s7, 2048 }
  0x3d   : > { %v220_v21 = vadd.f32 %v1306_v19, %v1303_v18  ;;  %v223_v25 = vadd.f32 %v1316_v23, %v1313_v22  ;;  %v1323_v26 = vld [vmem:[%s1250_s11 + $0x70] sm:$0xff]  ;;  %v1326_v27 = vld [vmem:[%s1250_s11 + $0x78] sm:$0xff]  ;;  %v252_v28 = vmax.f32 %v1303_v18, %v1306_v19  ;;  %v255_v31 = vmax.f32 %v1313_v22, %v1316_v23  ;;  %v261_v32 = vld [vmem:[%s1486_s1] sm:$0xff]  ;;  %p1044_p6 = scmp.ne.s32.totalorder %s1437_s7, %s1043_s20  ;;  %p1495_p11 = scmp.ne.s32.totalorder %s1492_s24, 0 }
  0x3e   : > { %v226_v29 = vadd.f32 %v1326_v27, %v1323_v26  ;;  %v258_v30 = vmax.f32 %v1323_v26, %v1326_v27  ;;  %v262_v33 = vld [vmem:[%s1486_s1 + $0x8] sm:$0xff]  ;;  %v263_v36 = vld [vmem:[%s1486_s1 + $0x10] sm:$0xff]  ;;  %v264_v37 = vld [vmem:[%s1486_s1 + $0x18] sm:$0xff]  ;;  %v284_v52 = vadd.s32 4294967288, %v279_v51  ;;  %v291_v59 = vadd.s32 4294967280, %v279_v51  ;;  %s1117_s22 = smov [#allocation5]  }
  0x3f   : > { %215 = vadd.xlane.f32.xlu1 %v214_v10  ;;  %v932_v34 = vpack.c.bf16 %v262_v33, %v261_v32  ;;  %v935_v38 = vpack.c.bf16 %v264_v37, %v263_v36  ;;  %v265_v39 = vld [vmem:[%s1486_s1 + $0x20] sm:$0xff]  ;;  %v266_v40 = vld [vmem:[%s1486_s1 + $0x28] sm:$0xff]  ;;  %v267_v42 = vld [vmem:[%s1486_s1 + $0x30] sm:$0xff]  ;;  %v282_v61 = vsub.s32 %v279_v51, %v1366_v55  ;;  %v298_v63 = vadd.s32 4294967272, %v279_v51  ;;  %p1045_p12 = pnand %p1044_p6, %p1495_p11  ;;  %s1047_s26 = sshll.u32 %s1117_s22, 4  ;;  %s1048_s26 = int_to_ptr.vmem [resolvable:$false] %s1047_s26 }
  0x40   : > { %209 = vadd.xlane.f32.xlu0 %v208_v11  ;;  %v938_v41 = vpack.c.bf16 %v266_v40, %v265_v39  ;;  %v268_v43 = vld [vmem:[%s1486_s1 + $0x38] sm:$0xff]  ;;  %v287_v56 = vsub.s32 %v284_v52, %v1366_v55  ;;  %v305_v3 = vadd.s32 4294967264, %v279_v51  ;;  %v312_v11 = vadd.s32 4294967256, %v279_v51  ;;  %s1049_s27 = scalar_lea.vmem %s1048_s26, 4096  ;;  %p1050_p8 = scmp.lt.s32.totalorder %s1437_s7, %s1048_s26 }
  0x41   : > { %933 = vmatpush3.bf16.msra.mxu0 %v932_v34  ;;  %945 = vmatpush3.bf16.msra.mxu1 %v932_v34  ;;  %v941_v44 = vpack.c.bf16 %v268_v43, %v267_v42  ;;  %v326_v33 = vadd.s32 4294967240, %v279_v51  ;;  %vm317_vm5 = vcmask 392512   ;;  %vm324_vm6 = vcmask 458112   ;;  %p1046_p13 = pneg %p1045_p12  ;;  %p1051_p10 = scmp.lt.s32.totalorder %s1049_s27, %s1043_s20 }
  0x42   : > { %934 = vmatprep.subr.bf16.mxu0 %v1114_v35  ;;  %946 = vmatprep.subr.bf16.mxu1 %v1114_v35  ;;  %vm331_vm7 = vcmask 523712   ;;  %vm333_vm8 = vcmask 523264   ;;  %vm531_vm9 = vcmask 1043456   ;;  %vm527_vm10 = vcmask 31744  }
  0x43   : > { %241 = vmax.xlane.f32.xlu1 %v240_v12  ;;  %v294_v12 = vsub.s32 %v291_v59, %v1366_v55  ;;  %p1052_p0 = por %p1051_p10, %p1050_p8 }
  0x44   : > { %238 = vmax.xlane.f32.xlu0 %v237_v13 }
  0x45   : > { %936 = vmatpush3.bf16.msra.mxu0 %v935_v38  ;;  %948 = vmatpush3.bf16.msra.mxu1 %v935_v38  ;;  %p1053_p2 = pnand %p1052_p0, %p1046_p13 }
  0x46   : > { %937 = vmatprep.subr.bf16.mxu0 %v1114_v35  ;;  %949 = vmatprep.subr.bf16.mxu1 %v1114_v35 }
  0x47   : > { %244 = vmax.xlane.f32.xlu1 %v243_v16 }
  0x48   : > { %218 = vadd.xlane.f32.xlu0 %v217_v17  ;;  %v319_v17 = vadd.s32 4294967248, %v279_v51 }
  0x49   : > { %939 = vmatpush3.bf16.msra.mxu0 %v938_v41  ;;  %951 = vmatpush3.bf16.msra.mxu1 %v938_v41 }
  0x4a   : > { %940 = vmatprep.subr.bf16.mxu0 %v1114_v35  ;;  %952 = vmatprep.subr.bf16.mxu1 %v1114_v35  ;;  %v322_v35 = vsub.s32 %v319_v17, %v1366_v55 }
  0x4b   : > { %247 = vmax.xlane.f32.xlu1 %v246_v20 }
  0x4c   : > { %221 = vadd.xlane.f32.xlu0 %v220_v21  ;;  %v301_v21 = vsub.s32 %v298_v63, %v1366_v55 }
  0x4d   : > { %942 = vmatpush3.bf16.msra.mxu0 %v941_v44  ;;  %954 = vmatpush3.bf16.msra.mxu1 %v941_v44 }
  0x4e   : > { %921 = vmatprep.subr.mxu1 %v1116_v45  ;;  %926 = vmatprep.subr.mxu0 %v1116_v45 }
  0x4f   : > { %250 = vmax.xlane.f32.xlu1 %v249_v24 }
  0x50   : > { %224 = vadd.xlane.f32.xlu0 %v223_v25  ;;  %v308_v25 = vsub.s32 %v305_v3, %v1366_v55 }
  0x53   : > { %253 = vmax.xlane.f32.xlu1 %v252_v28 }
  0x54   : > { %227 = vadd.xlane.f32.xlu0 %v226_v29 }
  0x57   : > { %259 = vmax.xlane.f32.xlu1 %v258_v30  ;;  %v315_v30 = vsub.s32 %v312_v11, %v1366_v55 }
  0x58   : > { %256 = vmax.xlane.f32.xlu0 %v255_v31 }
  0xc8   : > { %v213_v46 = vpop.xlane.xlu1 %212 }
  0xc9   : > { %v207_v47 = vpop.xlane.xlu0 %206  ;;  %v231_v13 = vmul.f32 0.00390625, %v213_v46 }
  0xca   : > { %v229_v62 = vmul.f32 0.00390625, %v207_v47  ;;  %v329_v47 = vsub.s32 %v326_v33, %v1366_v55 }
  0xcb   : > { %v295_v34 = vrot.slane %v231_v13, %v294_v12 }
  0xcc   : > { %v216_v49 = vpop.xlane.xlu1 %215  ;;  %v283_v20 = vrot.slane %v229_v62, %v282_v61 }
  0xcd   : > { %v210_v50 = vpop.xlane.xlu0 %209  ;;  %v232_v24 = vmul.f32 0.00390625, %v216_v49 }
  0xce   : > { %v230_v57 = vmul.f32 0.00390625, %v210_v50 }
  0xcf   : > { %v302_v37 = vrot.slane %v232_v24, %v301_v21 }
  0xd0   : > { %v242_v53 = vpop.xlane.xlu1 %241  ;;  %v288_v7 = vrot.slane %v230_v57, %v287_v56 }
  0xd1   : > { %v239_v54 = vpop.xlane.xlu0 %238  ;;  %v422_v39 = vrot.slane %v242_v53, %v287_v56 }
  0xd2   : > { %v290_v29 = vsel %vm289_vm1, %v288_v7, %v283_v20  ;;  %v418_v40 = vrot.slane %v239_v54, %v282_v61  ;;  %v269_v20 = vld [vmem:[%s1487_s2] sm:$0xf] }
  0xd3   : > { %v297_v41 = vsel %vm296_vm2, %v295_v34, %v290_v29 }
  0xd4   : > { %v245_v58 = vpop.xlane.xlu1 %244  ;;  %v304_v51 = vsel %vm303_vm3, %v302_v37, %v297_v41  ;;  %v423_v53 = vsel %vm289_vm1, %v422_v39, %v418_v40 }
  0xd5   : > { %v219_v60 = vpop.xlane.xlu0 %218  ;;  %v427_v43 = vrot.slane %v245_v58, %v294_v12 }
  0xd6   : > { %v233_v28 = vmul.f32 0.00390625, %v219_v60 }
  0xd7   : > { %v428_v58 = vsel %vm296_vm2, %v427_v43, %v423_v53 }
  0xd8   : > { %v248_v10 = vpop.xlane.xlu1 %247  ;;  %v309_v42 = vrot.slane %v233_v28, %v308_v25 }
  0xd9   : > { %v222_v16 = vpop.xlane.xlu0 %221  ;;  %v432_v48 = vrot.slane %v248_v10, %v301_v21 }
  0xda   : > { %v234_v31 = vmul.f32 0.00390625, %v222_v16  ;;  %v311_v54 = vsel %vm310_vm4, %v309_v42, %v304_v51 }
  0xdb   : > { %v433_v62 = vsel %vm303_vm3, %v432_v48, %v428_v58 }
  0xdc   : > { %v251_v32 = vpop.xlane.xlu1 %250  ;;  %v316_v44 = vrot.slane %v234_v31, %v315_v30 }
  0xdd   : > { %v225_v36 = vpop.xlane.xlu0 %224  ;;  %v437_v52 = vrot.slane %v251_v32, %v308_v25 }
  0xde   : > { %v235_v38 = vmul.f32 0.00390625, %v225_v36  ;;  %v318_v59 = vsel %vm317_vm5, %v316_v44, %v311_v54 }
  0xdf   : > { %v438_v10 = vsel %vm310_vm4, %v437_v52, %v433_v62 }
  0xe0   : > { %v254_v46 = vpop.xlane.xlu1 %253  ;;  %v323_v49 = vrot.slane %v235_v38, %v322_v35  ;;  %v686_v38 = vsub.s32 0, %v1366_v55 }
  0xe1   : > { %v228_v50 = vpop.xlane.xlu0 %227  ;;  %v442_v56 = vrot.slane %v254_v46, %v315_v30 }
  0xe2   : > { %v236_v57 = vmul.f32 0.00390625, %v228_v50  ;;  %v325_v7 = vsel %vm324_vm6, %v323_v49, %v318_v59 }
  0xe3   : > { %v443_v13 = vsel %vm317_vm5, %v442_v56, %v438_v10 }
  0xe4   : > { %v330_v60 = vrot.slane %v236_v57, %v329_v47  ;;  %v260_v61 = vpop.xlane.xlu1 %259 }
  0xe5   : > { %v257_v63 = vpop.xlane.xlu0 %256  ;;  %v452_v3 = vrot.slane %v260_v61, %v329_v47 }
  0xe6   : > { %v447_v11 = vrot.slane %v257_v63, %v322_v35  ;;  %v332_v12 = vsel %vm331_vm7, %v330_v60, %v325_v7 }
  0xe7   : > { %900 = vmatmul.mubr.msk.f32.vlgmr.msra.gmra.mrb[0].mxu0 %vm333_vm8, %v332_v12 }
  0xe8   : > { %v448_v16 = vsel %vm324_vm6, %v447_v11, %v443_v13  ;;  %928 = vmatprep.mubr.msk.f32.mxu0 %vm1115_vm0, %v1116_v45  ;;  %927 = vmatpush3.msk.msra.mxu0 %vm531_vm9, %v269_v20 }
  0xe9   : > { %v453_v17 = vsel %vm331_vm7, %v452_v3, %v448_v16 }
  0xea   : > { %919 = vmatmul.mubr.msk.f32.vlgmr.msra.gmra.mrb[0].mxu1 %vm333_vm8, %v453_v17 }
  0xeb   : > { %923 = vmatprep.mubr.msk.f32.mxu1 %vm1115_vm0, %v1116_v45  ;;  %922 = vmatpush3.msk.msra.mxu1 %vm531_vm9, %v269_v20 }
 0x1ba   : > { %v402_v21 = vpop.f32.mrb[0].mxu0 }
 0x1bb   : > { %v406_v24 = vmax.f32 %v402_v21, 0.0  ;;  %v901_v25 = vpop.f32.mrb[1].mxu0 }
 0x1bd   : > { %v522_v28 = vpop.f32.mrb[0].mxu1  ;;  %929 = vmatmul.mubr.msk.f32.vlgmr.msra.gmra.mrb[2].mxu0 %vm527_vm10, %v406_v24 }
 0x1be   : > { %v526_v29 = vmax.f32 %v522_v28, 0.0  ;;  %v920_v30 = vpop.f32.mrb[1].mxu1 }
 0x1c0   : > { %924 = vmatmul.mubr.msk.f32.vlgmr.msra.gmra.mrb[2].mxu1 %vm527_vm10, %v526_v29 }
 0x290   : > { %v674_v31 = vpop.f32.mrb[2].mxu0 }
 0x291   : > { %v930_v32 = vpop.f32.mrb[3].mxu0 }
 0x293   : > { %v601_v33 = vpop.f32.mrb[2].mxu1 }
 0x294   : > { %v675_v45 = vadd.f32 %v674_v31, %v601_v33  ;;  %v925_v34 = vpop.f32.mrb[3].mxu1 }
 0x296   : > { %v853_v35 = vmul.f32 -1.442695, %v675_v45 }
 0x298   : > { %1009 = vpow2.f32 %v853_v35 }
 0x2a2   : > { %v1010_v36 = vpop.eup %1009 }
 0x2a3   : > { %v681_v37 = vadd.f32 1.0, %v1010_v36 }
 0x2a5   : > { %1011 = vrcp.f32 %v681_v37 }
 0x2af   : > { %v1012_v39 = vpop.eup %1011 }
 0x2b0   : > { %v687_v40 = vrot.slane %v1012_v39, %v686_v38 }
 0x2b2   : > { %693 = vbcast.lane.b32.xlu1 %v687_v40, 264  ;;  %689 = vbcast.lane.b32.xlu0 %v687_v40, 256 }
 0x2b6   : > { %697 = vbcast.lane.b32.xlu1 %v687_v40, 272  ;;  %705 = vbcast.lane.b32.xlu0 %v687_v40, 288 }
 0x2ba   : > { %701 = vbcast.lane.b32.xlu1 %v687_v40, 280  ;;  %713 = vbcast.lane.b32.xlu0 %v687_v40, 304 }
 0x2be   : > { %709 = vbcast.lane.b32.xlu1 %v687_v40, 296 }
 0x2c2   : > { %717 = vbcast.lane.b32.xlu1 %v687_v40, 312 }
 0x324   : > { %v694_v41 = vpop.permute.xlu1 %693  ;;  %v690_v42 = vpop.permute.xlu0 %689 }
 0x325   : > { %v721_v43 = vmul.f32 %v694_v41, %v1279_v8  ;;  %v722_v44 = vmul.f32 %v694_v41, %v1282_v9  ;;  %v719_v46 = vmul.f32 %v690_v42, %v1263_v2  ;;  %v720_v55 = vmul.f32 %v690_v42, %v1268_v4 }
 0x327   : > { %737 = vst [vmem:[%s1404_s6 + $0x10] sm:$0xff] %v721_v43  ;;  %738 = vst [vmem:[%s1404_s6 + $0x18] sm:$0xff] %v722_v44 }
 0x328   : > { %735 = vst [vmem:[%s1404_s6] sm:$0xff] %v719_v46  ;;  %736 = vst [vmem:[%s1404_s6 + $0x8] sm:$0xff] %v720_v55  ;;  %v698_v8 = vpop.permute.xlu1 %697  ;;  %v706_v2 = vpop.permute.xlu0 %705 }
 0x329   : > { %v723_v4 = vmul.f32 %v698_v8, %v1257_v0  ;;  %v724_v9 = vmul.f32 %v698_v8, %v1260_v1  ;;  %v727_v47 = vmul.f32 %v706_v2, %v1293_v14  ;;  %v728_v48 = vmul.f32 %v706_v2, %v1296_v15 }
 0x32b   : > { %739 = vst [vmem:[%s1404_s6 + $0x20] sm:$0xff] %v723_v4  ;;  %740 = vst [vmem:[%s1404_s6 + $0x28] sm:$0xff] %v724_v9 }
 0x32c   : > { %743 = vst [vmem:[%s1404_s6 + $0x40] sm:$0xff] %v727_v47  ;;  %744 = vst [vmem:[%s1404_s6 + $0x48] sm:$0xff] %v728_v48  ;;  %v702_v49 = vpop.permute.xlu1 %701  ;;  %v714_v50 = vpop.permute.xlu0 %713 }
 0x32d   : > { %v725_v0 = vmul.f32 %v702_v49, %v1271_v5  ;;  %v726_v51 = vmul.f32 %v702_v49, %v1274_v6  ;;  %v731_v1 = vmul.f32 %v714_v50, %v1313_v22  ;;  %v732_v14 = vmul.f32 %v714_v50, %v1316_v23 }
 0x32f   : > { %741 = vst [vmem:[%s1404_s6 + $0x30] sm:$0xff] %v725_v0  ;;  %742 = vst [vmem:[%s1404_s6 + $0x38] sm:$0xff] %v726_v51 }
 0x330   : > { %747 = vst [vmem:[%s1404_s6 + $0x60] sm:$0xff] %v731_v1  ;;  %748 = vst [vmem:[%s1404_s6 + $0x68] sm:$0xff] %v732_v14  ;;  %v710_v15 = vpop.permute.xlu1 %709 }
 0x331   : > { %v729_v52 = vmul.f32 %v710_v15, %v1303_v18  ;;  %v730_v57 = vmul.f32 %v710_v15, %v1306_v19 }
 0x333   : > { %745 = vst [vmem:[%s1404_s6 + $0x50] sm:$0xff] %v729_v52  ;;  %746 = vst [vmem:[%s1404_s6 + $0x58] sm:$0xff] %v730_v57 }
 0x334   : > { %v718_v5 = vpop.permute.xlu1 %717 }
 0x335   : > { %v733_v6 = vmul.f32 %v718_v5, %v1323_v26  ;;  %v734_v18 = vmul.f32 %v718_v5, %v1326_v27 }
 0x337   : > { %749 = vst [vmem:[%s1404_s6 + $0x70] sm:$0xff] %v733_v6  ;;  %750 = vst [vmem:[%s1404_s6 + $0x78] sm:$0xff] %v734_v18 }
 0x338   : > { %1056 = shalt.err (!%p1053_p2)
}
 0x339   : > { %s1057_s28 = scalar_lea.hbm %s1435_s19, 2048  ;;  %s1061_s10 = scalar_lea.hbm %s1488_s3, 4096 }
 0x33a   : > { %p1058_p4 = scmp.ne.s32.totalorder %s1435_s19, %s1057_s28  ;;  %p1062_p9 = scmp.lt.u32.totalorder %s1435_s19, %s1488_s3 }
 0x33b   : > { %p1063_p1 = scmp.lt.u32.totalorder %s1061_s10, %s1057_s28  ;;  %p1065_p6 = scmp.lt.u32.totalorder %s1057_s28, %s1435_s19 }
 0x33c   : > { %p1059_p5 = pnand %p1058_p4, %p1495_p11 }
 0x33d   : > { %p1064_p3 = por %p1063_p1, %p1062_p9 }
 0x33e   : > { %p1060_p7 = pneg %p1059_p5 }
 0x33f   : > { %p1066_p12 = por %p1065_p6, %p1064_p3 }
 0x341   : > { %p1067_p13 = pnand %p1066_p12, %p1060_p7 }
 0x343   : > { %1070 = shalt.err (!%p1067_p13)
}
 0x344   : > { %s1118_s4 = smov 256   ;;  %s1119_s6 = smov 16  }
 0x345   : > { %958 = dma.vmem_to_hbm [thread:$0]  (%p1495_p11), %s1437_s7, 2048, %s1435_s19, %s752_s16, %s1118_s4, %s1118_s4, %s1119_s6  }
 0x346 PF: > { %s780_s9 = sand.u32 1, %s1097_s12   ;;  %p1496_p8 = scmp.ne.s32.totalorder %s1493_s25, 0 }
 0x347   : > { %p1497_p10 = scmp.ge.s32.totalorder %s1109_s15, 2  ;;  %s781_s8 = scalar_lea.sflag [#allocation4], %s780_s9 }
 0x349   : > { %p965_p0 = pnand %p1497_p10, %p1496_p8 }
 0x34b   : > { %1092 = dma.done.wait (!%p965_p0), %s781_s8, 2048  }
 0x34c   : > { %1094 = vsyncadd (!%p965_p0), %s781_s8, 4294965248  ;;  %p16_p2 = scmp.ge.s32.totalorder %s1165_s18, 4   ;;  %s1498_s12 = smov %s1101_s13 }
 0x34d   : > { %s1499_s13 = smov %s1105_s14  ;;  %s1500_s14 = smov %s1177_s21 }
 0x34e   : > { %s1501_s15 = smov %s1165_s18  ;;  %18 = sbr.rel (!%p16_p2) target bundleno = 5 (0x5), region = 77 }
 0x355   :  { %786 = vsyncpa [#allocation3], 1 }
 0x356   :  { %788 = vsyncpa [#allocation3 + $0x1], 1 }
 0x357   :  { %789 = vsyncpa [#allocation4], 1 }
 0x358   :  { %791 = vsyncpa [#allocation4 + $0x1], 1 }

</bundles_post_ra>
